<compile_context>
chip_gen: v5e
topology: v5e:2x2
jax: 0.10.0
libtpu: 0.0.40
codegen_flags: <defaults>
</compile_context>

<pallas_src>
import jax
import jax.numpy as jnp
from jax.experimental import pallas as pl
from jax.experimental.pallas import tpu as pltpu


def _shifted_sinh_kernel(shift_ref, x_ref, o_ref):
    # shift_ref: SMEM (1,1) f32 scalar; x_ref/o_ref: VMEM tiles in the I/O dtype.
    shift = shift_ref[0, 0]
    z = x_ref[...].astype(jnp.float32) + shift
    # sinh(z) = 0.5 * (e^z - e^-z) = 0.5 * (e - 1/e)  -- one exp instead of two.
    e = jnp.exp(z)
    # Fast vrcp + one Newton-Raphson step on the VPU (free slots) ~ full f32 precision.
    r = pl.reciprocal(e, approx=True)
    rn = r * (2.0 - e * r)
    # Where e is 0 or inf the Newton step would produce NaN (0*inf); keep raw vrcp
    # there (vrcp(0)=inf, vrcp(inf)=0), matching the exact-divide behaviour.
    r = jnp.where((e > 0.0) & (e < jnp.inf), rn, r)
    o_ref[...] = (0.5 * (e - r)).astype(o_ref.dtype)


def shifted_sinh(
    x: jax.Array,
    shift: jax.Array,
    *,
    target_block_bytes: int = 6 * 1024 * 1024,
    donate_x: bool = False,
) -> jax.Array:
    """Elementwise sinh(x + shift). `shift` is a scalar (0-d) float32 parameter."""
    orig_shape = x.shape
    dtype = x.dtype
    n = x.size
    if n == 0:
        return x
    itemsize = jnp.dtype(dtype).itemsize

    shift_f32 = jnp.asarray(shift, dtype=jnp.float32)
    shift_smem = shift_f32.reshape(1, 1)

    flat = x.reshape(-1)
    n_main = (n // 128) * 128

    if n_main == 0:
        # Tiny input (< 128 elements): a kernel launch is pure overhead.
        return jnp.sinh(flat.astype(jnp.float32) + shift_f32).astype(dtype).reshape(orig_shape)

    # ---- Lane-dense last dim: largest multiple of 128 (<= 8192) dividing n_main. ----
    lane = 128
    cand = (min(8192, n_main) // 128) * 128
    while cand >= 128:
        if n_main % cand == 0:
            lane = cand
            break
        cand -= 128
    rows = n_main // lane
    slab = flat[:n_main].reshape(rows, lane)

    # ---- Row tile: ~target_block_bytes, dtype-native sublane multiple. ----
    mult = max(8, 32 // itemsize)          # 8 for f32, 16 for bf16, 32 for int8/fp8
    tr = target_block_bytes // (lane * itemsize)
    tr = max(mult, (tr // mult) * mult)

    # Cap per-block bytes so 2 in + 2 out double buffers stay <= ~40 MiB (v7x-safe).
    max_block_bytes = 10 * 1024 * 1024
    tr_cap = max(mult, (max_block_bytes // (lane * itemsize)) // mult * mult)
    tr = min(tr, tr_cap)

    # Guarantee >= 2 grid steps when rows permit (v7x has 2 TensorCores to shard over).
    if rows >= 2 * mult:
        tr = min(tr, max(mult, ((rows // 2) // mult) * mult))
    if tr >= rows:
        tr = rows                          # full-extent block along rows is always legal

    grid = pl.cdiv(rows, tr)               # ragged final block handled by Pallas masking

    block_bytes = tr * lane * itemsize
    # Explicit scoped-VMEM limit: big enough for the pipelined buffers + headroom,
    # small enough for v7x's 64 MiB physical VMEM.
    vmem_limit = int(max(32 * 1024 * 1024, min(48 * 1024 * 1024, 4 * block_bytes + 8 * 1024 * 1024)))

    kwargs = {}
    if donate_x:
        kwargs["input_output_aliases"] = {1: 0}   # alias x (input 1) onto the output

    out_slab = pl.pallas_call(
        _shifted_sinh_kernel,
        out_shape=jax.ShapeDtypeStruct((rows, lane), dtype),
        grid_spec=pltpu.PrefetchScalarGridSpec(
            num_scalar_prefetch=0,
            grid=(grid,),
            in_specs=[
                pl.BlockSpec(memory_space=pltpu.MemorySpace.SMEM),   # scalar shift
                pl.BlockSpec((tr, lane), lambda i: (i, 0)),          # x tile (native dtype)
            ],
            out_specs=pl.BlockSpec((tr, lane), lambda i: (i, 0)),
        ),
        compiler_params=pltpu.CompilerParams(
            dimension_semantics=("parallel",),
            vmem_limit_bytes=vmem_limit,
        ),
        cost_estimate=pl.CostEstimate(
            flops=8 * n_main,
            transcendentals=2 * n_main,
            bytes_accessed=2 * n_main * itemsize,
        ),
        **kwargs,
    )(shift_smem, slab)

    out_flat = out_slab.reshape(-1)
    if n_main < n:
        # Unaligned tail (< 128 elements): plain jnp.sinh, no padded slab round trip.
        tail = jnp.sinh(flat[n_main:].astype(jnp.float32) + shift_f32).astype(dtype)
        out_flat = jnp.concatenate([out_flat, tail])
    return out_flat.reshape(orig_shape)


if __name__ == "__main__":
    key = jax.random.PRNGKey(0)
    # Shapes consistent with a conv-net activation: NCHW = (2, 4, 16, 16)
    x = jax.random.normal(key, (2, 4, 16, 16), dtype=jnp.float32)

    # Deterministic parameter init, mirroring nn.Parameter(torch.tensor(init_shift)).
    init_shift = 0.25
    shift = jnp.asarray(init_shift, dtype=jnp.float32)

    y = jax.block_until_ready(shifted_sinh(x, shift))

    # Correctness check against plain JAX reference.
    y_ref = jnp.sinh(x + shift)
    assert y.shape == x.shape and y.dtype == x.dtype
    assert jnp.allclose(y, y_ref, atol=1e-5, rtol=1e-5)

    print("KERNEL_OK")
</pallas_src>

<mosaic_0001>
module attributes {stable_mosaic.version = 11 : i64} {
  func.func @_shifted_sinh_kernel(%arg0: i32, %arg1: memref<1x1xf32, #tpu.memory_space<smem>>, %arg2: memref<1x2048xf32, #tpu.memory_space<vmem>>, %arg3: memref<1x2048xf32, #tpu.memory_space<vmem>>) attributes {dimension_semantics = [#tpu.dimension_semantics<parallel>], iteration_bounds = array<i64: 1>, scalar_prefetch = 0 : i64, scratch_operands = 0 : i64, tpu.core_type = #tpu.core_type<tc>, window_params = [{transform_indices = @transform_0, window_bounds = array<i64: 1, 1>}, {transform_indices = @transform_1, window_bounds = array<i64: 1, 2048>}, {transform_indices = @transform_2, window_bounds = array<i64: 1, 2048>}]} {
    %c0 = arith.constant 0 : index
    %c0_0 = arith.constant 0 : index
    %0 = memref.load %arg1[%c0, %c0_0] : memref<1x1xf32, #tpu.memory_space<smem>>
    %c0_1 = arith.constant 0 : index
    %c0_2 = arith.constant 0 : index
    %1 = vector.load %arg2[%c0_1, %c0_2] : memref<1x2048xf32, #tpu.memory_space<vmem>>, vector<1x2048xf32>
    %2 = vector.broadcast %0 : f32 to vector<1x2048xf32>
    %3 = arith.addf %1, %2 : vector<1x2048xf32>
    %4 = math.exp %3 : vector<1x2048xf32>
    %5 = tpu.reciprocal %4 {approx = true} : vector<1x2048xf32> -> vector<1x2048xf32>
    %6 = arith.mulf %4, %5 : vector<1x2048xf32>
    %cst = arith.constant 2.000000e+00 : f32
    %7 = vector.broadcast %cst : f32 to vector<1x2048xf32>
    %8 = arith.subf %7, %6 : vector<1x2048xf32>
    %9 = arith.mulf %5, %8 : vector<1x2048xf32>
    %cst_3 = arith.constant 0.000000e+00 : f32
    %10 = vector.broadcast %cst_3 : f32 to vector<1x2048xf32>
    %11 = arith.cmpf ogt, %4, %10 : vector<1x2048xf32>
    %cst_4 = arith.constant 0x7F800000 : f32
    %12 = vector.broadcast %cst_4 : f32 to vector<1x2048xf32>
    %13 = arith.cmpf olt, %4, %12 : vector<1x2048xf32>
    %14 = arith.andi %11, %13 : vector<1x2048xi1>
    %15 = arith.select %14, %9, %5 : vector<1x2048xi1>, vector<1x2048xf32>
    %16 = arith.subf %4, %15 : vector<1x2048xf32>
    %cst_5 = arith.constant 5.000000e-01 : f32
    %17 = vector.broadcast %cst_5 : f32 to vector<1x2048xf32>
    %18 = arith.mulf %17, %16 : vector<1x2048xf32>
    %c0_6 = arith.constant 0 : index
    %c0_7 = arith.constant 0 : index
    %19 = vector.load %arg3[%c0_6, %c0_7] : memref<1x2048xf32, #tpu.memory_space<vmem>>, vector<1x2048xf32>
    tpu.vector_store %arg3[%c0_6, %c0_7], %18 {strides = array<i32>} : memref<1x2048xf32, #tpu.memory_space<vmem>>, vector<1x2048xf32>,
    return
  }
  func.func @transform_0(%arg0: i32) -> (i32, i32) {
    %c0_i32 = arith.constant 0 : i32
    %c0_i32_0 = arith.constant 0 : i32
    %c0_i32_1 = arith.constant 0 : i32
    return %c0_i32, %c0_i32_0 : i32, i32
  }
  func.func @transform_1(%arg0: i32) -> (i32, i32) {
    %c0_i32 = arith.constant 0 : i32
    %c0_i32_0 = arith.constant 0 : i32
    return %arg0, %c0_i32 : i32, i32
  }
  func.func @transform_2(%arg0: i32) -> (i32, i32) {
    %c0_i32 = arith.constant 0 : i32
    %c0_i32_0 = arith.constant 0 : i32
    return %arg0, %c0_i32 : i32, i32
  }
}

</mosaic_0001>

<bundles_post_ra>
// kernel: tpu_custom_call.1
= control target key start
LH: loop header
LB: loop body
LE: loop exit
PB: predicated region body
PF: predicated region fallthrough
CT: control target
= control target key end

     0   :  { %8 = vsyncpa [#allocation4], 0  ;;  %s164_s0 = inlined_call_operand.<no memory space> [shape: f32[1,1], index: 0, kind: input, shape index: {}]   ;;  %s165_s1 = inlined_call_operand.hbm [shape: f32[1,2048], index: 1, kind: input, shape index: {}]   ;;  %s166_s2 = inlined_call_operand.hbm [shape: f32[1,2048], index: 2, kind: output, shape index: {}]  }
   0x1   :  { %9 = vsyncpa [#allocation5], 0  ;;  %s17_s11 = sshll.u32 %s165_s1, 4  ;;  %s138_s12 = smov [#allocation3]   ;;  %s18_s11 = int_to_ptr.hbm [resolvable:$true] %s17_s11 }
   0x2   :  { %s19_s13 = sshll.u32 %s138_s12, 4  ;;  %s20_s13 = int_to_ptr.vmem [resolvable:$true] %s19_s13 }
   0x3   :  { %22 = dma.hbm_to_vmem [thread:$0]  %s18_s11, 256, %s20_s13, [#allocation4]  }
   0x4   :  { %134 = dma.done.wait [#allocation4], 256  }
   0x5   :  { %135 = vsyncadd [#allocation4], 4294967040  ;;  %v30_v0 = vstv %s164_s0  ;;  %v28_v1 = vld [vmem:[#allocation3] sm:$0xff]  ;;  %v29_v2 = vld [vmem:[#allocation3 + $0x8] sm:$0xff]  ;;  %s139_s0 = smov [#allocation6]   ;;  %s66_s18 = sshll.u32 %s166_s2, 4  ;;  %s67_s18 = int_to_ptr.hbm [resolvable:$true] %s66_s18 }
   0x6   :  { %v31_v3 = vadd.f32 %v30_v0, %v28_v1  ;;  %v32_v4 = vadd.f32 %v30_v0, %v29_v2  ;;  %s64_s1 = sshll.u32 %s139_s0, 4  ;;  %s65_s1 = int_to_ptr.vmem [resolvable:$true] %s64_s1 }
   0x8   :  { %v33_v5 = vmul.f32 1.442695, %v31_v3  ;;  %v35_v6 = vmul.f32 1.442695, %v32_v4 }
   0xa   :  { %78 = vpow2.f32 %v33_v5 }
   0xb   :  { %80 = vpow2.f32 %v35_v6 }
  0x10   :  { %v79_v7 = vpop.eup %78 }
  0x11   :  { %v81_v8 = vpop.eup %80  ;;  %82 = vrcp.f32 %v79_v7  ;;  %vm45_vm0 = vcmp.gt.f32.partialorder %v79_v7, 0.0  ;;  %vm47_vm1 = vcmp.lt.f32.partialorder %v79_v7, inf }
  0x12   :  { %84 = vrcp.f32 %v81_v8  ;;  %vm46_vm2 = vcmp.gt.f32.partialorder %v81_v8, 0.0  ;;  %vm48_vm3 = vcmp.lt.f32.partialorder %v81_v8, inf  ;;  %vm49_vm4 = vmand %vm45_vm0, %vm47_vm1 }
  0x13   :  { %vm50_vm5 = vmand %vm46_vm2, %vm48_vm3 }
  0x17   :  { %v83_v9 = vpop.eup %82 }
  0x18   :  { %v85_v10 = vpop.eup %84  ;;  %v39_v11 = vmul.f32 %v83_v9, %v79_v7 }
  0x19   :  { %v40_v12 = vmul.f32 %v85_v10, %v81_v8 }
  0x1a   :  { %v41_v13 = vsub.f32 2.0, %v39_v11 }
  0x1b   :  { %v42_v14 = vsub.f32 2.0, %v40_v12 }
  0x1c   :  { %v43_v15 = vmul.f32 %v83_v9, %v41_v13 }
  0x1d   :  { %v44_v16 = vmul.f32 %v85_v10, %v42_v14 }
  0x1e   :  { %v51_v17 = vsel %vm49_vm4, %v43_v15, %v83_v9 }
  0x1f   :  { %v53_v18 = vsub.f32 %v79_v7, %v51_v17  ;;  %v52_v19 = vsel %vm50_vm5, %v44_v16, %v85_v10 }
  0x20   :  { %v54_v20 = vsub.f32 %v81_v8, %v52_v19 }
  0x21   :  { %v55_v21 = vmul.f32 0.5, %v53_v18 }
  0x22   :  { %v56_v22 = vmul.f32 0.5, %v54_v20 }
  0x23   :  { %57 = vst [vmem:[#allocation6] sm:$0xff] %v55_v21 }
  0x24   :  { %58 = vst [vmem:[#allocation6 + $0x8] sm:$0xff] %v56_v22 }
  0x25   :  { %69 = dma.vmem_to_hbm [thread:$0]  %s65_s1, 256, %s67_s18, [#allocation5]  }
  0x26   :  { %136 = dma.done.wait [#allocation5], 256  }
  0x27   :  { %137 = vsyncadd [#allocation5], 4294967040 }
  0x28   :  { %74 = vsyncpa [#allocation4], 1 }
  0x29   :  { %75 = vsyncpa [#allocation5], 1 }

</bundles_post_ra>
